<compile_context>
chip_gen: v7x
topology: tpu7x:2x2x1
jax: 0.10.0
libtpu: 0.0.40
codegen_flags: <defaults>
</compile_context>

<pallas_src>
import functools
import math

import jax
import jax.numpy as jnp
from jax import lax
from jax.experimental import pallas as pl
from jax.experimental.pallas import tpu as pltpu


def _round_up(x: int, m: int) -> int:
    return (x + m - 1) // m * m


def _ffn_kernel(seed_ref, x_ref, w1_ref, b1_ref, w2_ref, b2_ref, o_ref, acc_ref,
                *, dropout_p: float, training: bool):
    """One (row-tile, d_ff-tile) step of Linear2(dropout(relu(Linear1(x))))."""
    k = pl.program_id(1)
    nk = pl.num_programs(1)

    @pl.when(k == 0)
    def _():
        acc_ref[...] = jnp.zeros_like(acc_ref)

    # ---- Linear 1 chunk (MXU) + bias + ReLU (VPU, f32) ----
    h = jnp.dot(x_ref[...], w1_ref[...], preferred_element_type=jnp.float32)
    h = h + b1_ref[...]                      # b1 chunk is (1, tk), f32
    h = jnp.maximum(h, 0.0)

    # ---- Dropout (training only; inference = identity) ----
    if training and dropout_p > 0.0:
        # Counter-based stateless hash ("lowbias32" mix): each element of the
        # padded hidden activation [M_p, d_ff_p] gets a unique counter, so the
        # RNG stream is independent of the tiling (tm/tk) choice.
        # TODO(synk): statistically equivalent to torch.nn.Dropout, but not
        # bitwise identical to PyTorch's RNG stream.
        tm_blk, tk_blk = h.shape
        row0 = (pl.program_id(0) * tm_blk)
        col0 = (k * tk_blk)
        d_ff_total = nk * tk_blk

        r = lax.broadcasted_iota(jnp.int32, h.shape, 0)
        c = lax.broadcasted_iota(jnp.int32, h.shape, 1)
        idx = ((row0 + r).astype(jnp.uint32) * jnp.uint32(d_ff_total)
               + (col0 + c).astype(jnp.uint32))

        seed_u = seed_ref[0].astype(jnp.uint32)
        v = idx ^ (seed_u * jnp.uint32(0x9E3779B9))
        v = (v ^ (v >> 16)) * jnp.uint32(0x7FEB352D)
        v = (v ^ (v >> 15)) * jnp.uint32(0x846CA68B)
        v = v ^ (v >> 16)

        threshold = jnp.uint32(min(int(round(dropout_p * 4294967296.0)),
                                   4294967295))
        keep = v >= threshold
        scale = jnp.float32(1.0 / (1.0 - dropout_p))
        h = jnp.where(keep, h * scale, jnp.float32(0.0))

    # ---- Linear 2 chunk (MXU), accumulate in f32 VMEM scratch ----
    acc_ref[...] += jnp.dot(h.astype(w2_ref.dtype), w2_ref[...],
                            preferred_element_type=jnp.float32)

    # ---- Finalize on last reduction step: bias2 + cast + store ----
    @pl.when(k == nk - 1)
    def _():
        o_ref[...] = (acc_ref[...] + b2_ref[...]).astype(o_ref.dtype)


def feed_forward_block(x, params, *, dropout_p: float = 0.0,
                       training: bool = False, seed: int = 0,
                       tm: int = 256, tk_ff: int = 512,
                       compute_dtype=jnp.bfloat16):
    """x: [batch, seq, d_model] -> [batch, seq, d_model]."""
    w1, b1, w2, b2 = params["w1"], params["b1"], params["w2"], params["b2"]
    batch, seq, d_model = x.shape
    d_ff = w1.shape[1]
    out_dtype = x.dtype
    M = batch * seq

    # ---- Tile sizing (padded, MXU/lane friendly) ----
    tm_eff = min(_round_up(tm, 16), _round_up(M, 16))       # rows per tile
    M_p = _round_up(M, tm_eff)
    d_model_p = _round_up(d_model, 128)                     # lane-dense output
    tk = min(_round_up(tk_ff, 128), _round_up(d_ff, 128))   # d_ff reduction tile
    d_ff_p = _round_up(d_ff, tk)
    n_rows = M_p // tm_eff
    n_k = d_ff_p // tk

    # ---- Zero-pad operands (semantically neutral for this FFN) ----
    x2 = jnp.pad(x.reshape(M, d_model),
                 ((0, M_p - M), (0, d_model_p - d_model))).astype(compute_dtype)
    w1p = jnp.pad(w1, ((0, d_model_p - d_model), (0, d_ff_p - d_ff))).astype(compute_dtype)
    w2p = jnp.pad(w2, ((0, d_ff_p - d_ff), (0, d_model_p - d_model))).astype(compute_dtype)
    b1p = jnp.pad(b1.reshape(1, d_ff), ((0, 0), (0, d_ff_p - d_ff))).astype(jnp.float32)
    b2p = jnp.pad(b2.reshape(1, d_model), ((0, 0), (0, d_model_p - d_model))).astype(jnp.float32)
    seed_arr = jnp.array([seed], dtype=jnp.int32)

    # ---- VMEM budget (double-buffered tiles + f32 accumulator) ----
    in_sz = jnp.dtype(compute_dtype).itemsize
    out_sz = jnp.dtype(out_dtype).itemsize
    est = 2 * (tm_eff * d_model_p * in_sz          # x tile
               + d_model_p * tk * in_sz            # w1 tile
               + tk * 4                            # b1 tile
               + tk * d_model_p * in_sz            # w2 tile
               + d_model_p * 4                     # b2
               + tm_eff * d_model_p * out_sz)      # out tile
    est += tm_eff * d_model_p * 4                  # acc scratch
    vmem_limit = int(min(max(2 * est, 32 * 1024 * 1024), 96 * 1024 * 1024))

    cost = pl.CostEstimate(
        flops=4 * M_p * d_model_p * d_ff_p,
        transcendentals=0,
        bytes_accessed=(x2.size * in_sz + M_p * d_model_p * out_sz
                        + n_rows * (w1p.size * in_sz + w2p.size * in_sz
                                    + b1p.size * 4 + b2p.size * 4)),
    )

    kernel = functools.partial(_ffn_kernel, dropout_p=dropout_p, training=training)

    out2 = pl.pallas_call(
        kernel,
        out_shape=jax.ShapeDtypeStruct((M_p, d_model_p), out_dtype),
        grid_spec=pltpu.PrefetchScalarGridSpec(
            num_scalar_prefetch=1,                 # seed lands in SMEM
            grid=(n_rows, n_k),
            in_specs=[
                pl.BlockSpec((tm_eff, d_model_p), lambda i, k, seed: (i, 0)),  # x tile
                pl.BlockSpec((d_model_p, tk), lambda i, k, seed: (0, k)),      # W1 k-chunk
                pl.BlockSpec((1, tk), lambda i, k, seed: (0, k)),              # b1 k-chunk
                pl.BlockSpec((tk, d_model_p), lambda i, k, seed: (k, 0)),      # W2 k-chunk
                pl.BlockSpec((1, d_model_p), lambda i, k, seed: (0, 0)),       # b2
            ],
            out_specs=pl.BlockSpec((tm_eff, d_model_p), lambda i, k, seed: (i, 0)),
            scratch_shapes=[pltpu.VMEM((tm_eff, d_model_p), jnp.float32)],
        ),
        compiler_params=pltpu.CompilerParams(
            dimension_semantics=("parallel", "arbitrary"),   # M across cores, d_ff reduce
            vmem_limit_bytes=vmem_limit,
        ),
        cost_estimate=cost,
    )(seed_arr, x2, w1p, b1p, w2p, b2p)

    return out2[:M, :d_model].reshape(batch, seq, d_model)


def init_params(key, d_model: int, d_ff: int, dtype=jnp.float32):
    """Deterministic init mimicking nn.Linear's U(-1/sqrt(in), 1/sqrt(in))."""
    k1, k2, k3, k4 = jax.random.split(key, 4)
    bound1 = 1.0 / math.sqrt(d_model)
    bound2 = 1.0 / math.sqrt(d_ff)
    # stored as (in, out) == torch weight transposed
    w1 = jax.random.uniform(k1, (d_model, d_ff), dtype, -bound1, bound1)
    b1 = jax.random.uniform(k2, (1, d_ff), dtype, -bound1, bound1)
    w2 = jax.random.uniform(k3, (d_ff, d_model), dtype, -bound2, bound2)
    b2 = jax.random.uniform(k4, (1, d_model), dtype, -bound2, bound2)
    return {"w1": w1, "b1": b1, "w2": w2, "b2": b2}


def _reference(x, params):
    h = jnp.maximum(x @ params["w1"] + params["b1"][0], 0.0)
    return h @ params["w2"] + params["b2"][0]


if __name__ == "__main__":
    batch, seq, d_model, d_ff = 2, 8, 32, 64
    dropout_p = 0.1

    key = jax.random.PRNGKey(0)
    kx, kp = jax.random.split(key)
    x = jax.random.normal(kx, (batch, seq, d_model), jnp.float32)
    params = init_params(kp, d_model, d_ff)
    ref = _reference(x, params)

    # Inference path, f32 MXU operands (matches the PyTorch module in eval()).
    out_f32 = feed_forward_block(x, params, dropout_p=dropout_p, training=False,
                                 compute_dtype=jnp.float32)
    out_f32 = jax.block_until_ready(out_f32)
    assert out_f32.shape == (batch, seq, d_model)
    assert jnp.allclose(out_f32, ref, atol=1e-5, rtol=1e-5), "f32 mismatch vs reference"

    # Inference path, bf16 MXU operands / f32 accumulation (fast path on
    # v5e/v6e/v7x) — looser tolerance by design (operand rounding).
    out_bf16 = feed_forward_block(x, params, dropout_p=dropout_p, training=False,
                                  compute_dtype=jnp.bfloat16)
    out_bf16 = jax.block_until_ready(out_bf16)
    assert out_bf16.shape == (batch, seq, d_model)
    assert jnp.allclose(out_bf16, ref, atol=5e-2, rtol=5e-2), "bf16 mismatch vs reference"

    # Training-mode dropout smoke test (stateless counter-hash RNG;
    # statistically equivalent to torch.nn.Dropout, not bitwise identical).
    out_train = feed_forward_block(x, params, dropout_p=dropout_p, training=True,
                                   seed=123, compute_dtype=jnp.float32)
    out_train = jax.block_until_ready(out_train)
    assert out_train.shape == (batch, seq, d_model)
    assert bool(jnp.all(jnp.isfinite(out_train)))
    # Dropout must zero some activations' contribution -> output differs from eval.
    assert not bool(jnp.allclose(out_train, out_f32)), "dropout appears to be a no-op"

    print("KERNEL_OK")
</pallas_src>

<mosaic_0001>
module attributes {stable_mosaic.version = 11 : i64} {
  func.func @_ffn_kernel(%arg0: i32, %arg1: i32, %arg2: memref<1xi32, #tpu.memory_space<smem>>, %arg3: memref<16x128xf32, #tpu.memory_space<vmem>>, %arg4: memref<128x128xf32, #tpu.memory_space<vmem>>, %arg5: memref<1x128xf32, #tpu.memory_space<vmem>>, %arg6: memref<128x128xf32, #tpu.memory_space<vmem>>, %arg7: memref<1x128xf32, #tpu.memory_space<vmem>>, %arg8: memref<16x128xf32, #tpu.memory_space<vmem>>, %arg9: memref<16x128xf32, #tpu.memory_space<vmem>>) attributes {dimension_semantics = [#tpu.dimension_semantics<parallel>, #tpu.dimension_semantics<arbitrary>], iteration_bounds = array<i64: 1, 1>, scalar_prefetch = 1 : i64, scratch_operands = 1 : i64, tpu.core_type = #tpu.core_type<tc>, window_params = [{transform_indices = @transform_0, window_bounds = array<i64: 16, 128>}, {transform_indices = @transform_1, window_bounds = array<i64: 128, 128>}, {transform_indices = @transform_2, window_bounds = array<i64: 1, 128>}, {transform_indices = @transform_3, window_bounds = array<i64: 128, 128>}, {pipeline_mode = #tpu.pipeline_mode<synchronous>, transform_indices = @transform_4, window_bounds = array<i64: 1, 128>}, {transform_indices = @transform_5, window_bounds = array<i64: 16, 128>}]} {
    %c0_i32 = arith.constant 0 : i32
    %0 = arith.cmpi eq, %arg1, %c0_i32 : i32
    %1 = arith.extui %0 : i1 to i32
    %c0_i32_0 = arith.constant 0 : i32
    %2 = arith.cmpi ne, %1, %c0_i32_0 : i32
    scf.if %2 {
      %cst_16 = arith.constant 0.000000e+00 : f32
      %19 = vector.broadcast %cst_16 : f32 to vector<16x128xf32>
      %c0_17 = arith.constant 0 : index
      %c0_18 = arith.constant 0 : index
      %20 = vector.load %arg9[%c0_17, %c0_18] : memref<16x128xf32, #tpu.memory_space<vmem>>, vector<16x128xf32>
      tpu.vector_store %arg9[%c0_17, %c0_18], %19 {strides = array<i32>} : memref<16x128xf32, #tpu.memory_space<vmem>>, vector<16x128xf32>,
    } else {
    }
    %c0 = arith.constant 0 : index
    %c0_1 = arith.constant 0 : index
    %3 = vector.load %arg3[%c0, %c0_1] : memref<16x128xf32, #tpu.memory_space<vmem>>, vector<16x128xf32>
    %c0_2 = arith.constant 0 : index
    %c0_3 = arith.constant 0 : index
    %4 = vector.load %arg4[%c0_2, %c0_3] : memref<128x128xf32, #tpu.memory_space<vmem>>, vector<128x128xf32>
    %cst = arith.constant dense<0.000000e+00> : vector<16x128xf32>
    %5 = tpu.matmul %3, %4, %cst {dimension_numbers = #tpu.dot_dimension_numbers<[1], [0], [0], [1], [0, 0, 1, 1], [], []>} : vector<16x128xf32>, vector<128x128xf32>, vector<16x128xf32> -> vector<16x128xf32>
    %c0_4 = arith.constant 0 : index
    %c0_5 = arith.constant 0 : index
    %6 = vector.load %arg5[%c0_4, %c0_5] : memref<1x128xf32, #tpu.memory_space<vmem>>, vector<1x128xf32>
    %7 = vector.broadcast %6 : vector<1x128xf32> to vector<16x128xf32>
    %8 = arith.addf %5, %7 : vector<16x128xf32>
    %cst_6 = arith.constant 0.000000e+00 : f32
    %9 = vector.broadcast %cst_6 : f32 to vector<16x128xf32>
    %10 = arith.maximumf %8, %9 : vector<16x128xf32>
    %c0_7 = arith.constant 0 : index
    %c0_8 = arith.constant 0 : index
    %11 = vector.load %arg9[%c0_7, %c0_8] : memref<16x128xf32, #tpu.memory_space<vmem>>, vector<16x128xf32>
    %c0_9 = arith.constant 0 : index
    %c0_10 = arith.constant 0 : index
    %12 = vector.load %arg6[%c0_9, %c0_10] : memref<128x128xf32, #tpu.memory_space<vmem>>, vector<128x128xf32>
    %cst_11 = arith.constant dense<0.000000e+00> : vector<16x128xf32>
    %13 = tpu.matmul %10, %12, %cst_11 {dimension_numbers = #tpu.dot_dimension_numbers<[1], [0], [0], [1], [0, 0, 1, 1], [], []>} : vector<16x128xf32>, vector<128x128xf32>, vector<16x128xf32> -> vector<16x128xf32>
    %14 = arith.addf %11, %13 : vector<16x128xf32>
    %c0_12 = arith.constant 0 : index
    %c0_13 = arith.constant 0 : index
    %15 = vector.load %arg9[%c0_12, %c0_13] : memref<16x128xf32, #tpu.memory_space<vmem>>, vector<16x128xf32>
    tpu.vector_store %arg9[%c0_12, %c0_13], %14 {strides = array<i32>} : memref<16x128xf32, #tpu.memory_space<vmem>>, vector<16x128xf32>,
    %c0_i32_14 = arith.constant 0 : i32
    %16 = arith.cmpi eq, %arg1, %c0_i32_14 : i32
    %17 = arith.extui %16 : i1 to i32
    %c0_i32_15 = arith.constant 0 : i32
    %18 = arith.cmpi ne, %17, %c0_i32_15 : i32
    scf.if %18 {
      %c0_16 = arith.constant 0 : index
      %c0_17 = arith.constant 0 : index
      %19 = vector.load %arg9[%c0_16, %c0_17] : memref<16x128xf32, #tpu.memory_space<vmem>>, vector<16x128xf32>
      %c0_18 = arith.constant 0 : index
      %c0_19 = arith.constant 0 : index
      %20 = vector.load %arg7[%c0_18, %c0_19] : memref<1x128xf32, #tpu.memory_space<vmem>>, vector<1x128xf32>
      %21 = vector.broadcast %20 : vector<1x128xf32> to vector<16x128xf32>
      %22 = arith.addf %19, %21 : vector<16x128xf32>
      %c0_20 = arith.constant 0 : index
      %c0_21 = arith.constant 0 : index
      %23 = vector.load %arg8[%c0_20, %c0_21] : memref<16x128xf32, #tpu.memory_space<vmem>>, vector<16x128xf32>
      tpu.vector_store %arg8[%c0_20, %c0_21], %22 {strides = array<i32>} : memref<16x128xf32, #tpu.memory_space<vmem>>, vector<16x128xf32>,
    } else {
    }
    return
  }
  func.func @transform_0(%arg0: i32, %arg1: i32, %arg2: memref<1xi32, #tpu.memory_space<smem>>) -> (i32, i32) {
    %c0_i32 = arith.constant 0 : i32
    %c0_i32_0 = arith.constant 0 : i32
    return %arg0, %c0_i32 : i32, i32
  }
  func.func @transform_1(%arg0: i32, %arg1: i32, %arg2: memref<1xi32, #tpu.memory_space<smem>>) -> (i32, i32) {
    %c0_i32 = arith.constant 0 : i32
    %c0_i32_0 = arith.constant 0 : i32
    return %c0_i32, %arg1 : i32, i32
  }
  func.func @transform_2(%arg0: i32, %arg1: i32, %arg2: memref<1xi32, #tpu.memory_space<smem>>) -> (i32, i32) {
    %c0_i32 = arith.constant 0 : i32
    %c0_i32_0 = arith.constant 0 : i32
    return %c0_i32, %arg1 : i32, i32
  }
  func.func @transform_3(%arg0: i32, %arg1: i32, %arg2: memref<1xi32, #tpu.memory_space<smem>>) -> (i32, i32) {
    %c0_i32 = arith.constant 0 : i32
    %c0_i32_0 = arith.constant 0 : i32
    return %arg1, %c0_i32 : i32, i32
  }
  func.func @transform_4(%arg0: i32, %arg1: i32, %arg2: memref<1xi32, #tpu.memory_space<smem>>) -> (i32, i32) {
    %c0_i32 = arith.constant 0 : i32
    %c0_i32_0 = arith.constant 0 : i32
    %c0_i32_1 = arith.constant 0 : i32
    return %c0_i32, %c0_i32_0 : i32, i32
  }
  func.func @transform_5(%arg0: i32, %arg1: i32, %arg2: memref<1xi32, #tpu.memory_space<smem>>) -> (i32, i32) {
    %c0_i32 = arith.constant 0 : i32
    %c0_i32_0 = arith.constant 0 : i32
    return %arg0, %c0_i32 : i32, i32
  }
}

</mosaic_0001>

<bundles_post_ra>
// kernel: tpu_custom_call.1
= control target key start
LH: loop header
LB: loop body
LE: loop exit
PB: predicated region body
PF: predicated region fallthrough
CT: control target
= control target key end

     0   :  { %12 = vsyncpa [#allocation6], 0  ;;  %s689_s0 = inlined_call_operand.<no memory space> [shape: s32[1], index: 0, kind: input, shape index: {}]   ;;  %s690_s1 = inlined_call_operand.hbm [shape: f32[16,128], index: 1, kind: input, shape index: {}]   ;;  %s691_s2 = inlined_call_operand.hbm [shape: f32[128,128], index: 2, kind: input, shape index: {}]   ;;  %s692_s3 = inlined_call_operand.vmem [shape: f32[1,128], index: 3, kind: input, shape index: {}]   ;;  %s693_s4 = inlined_call_operand.hbm [shape: f32[128,128], index: 4, kind: input, shape index: {}]   ;;  %s694_s5 = inlined_call_operand.vmem [shape: f32[1,128], index: 5, kind: input, shape index: {}]   ;;  %s695_s6 = inlined_call_operand.hbm [shape: f32[16,128], index: 6, kind: output, shape index: {}]  }
   0x1   :  { %13 = vsyncpa [#allocation9], 0 }
   0x2   :  { %14 = vsyncpa [#allocation7], 0  ;;  %s575_s0 = smov [#allocation8]   ;;  %s576_s22 = smov [#allocation5]  }
   0x3   :  { %s32_s21 = sshll.u32 %s575_s0, 4  ;;  %s20_s23 = sshll.u32 %s576_s22, 4  ;;  %s33_s21 = int_to_ptr.vmem [resolvable:$true] %s32_s21  ;;  %s616_s23 = int_to_ptr.vmem [resolvable:$true] %s20_s23 }
   0x4   :  { %s481_s26 = scalar_lea.hbm %s691_s2, 2048 }
   0x5   :  { %p482_p0 = scmp.ne.s32.totalorder %s691_s2, %s481_s26  ;;  %p485_p1 = scmp.lt.u32.totalorder %s481_s26, %s691_s2 }
   0x7   :  { %p487_p2 = pnand %p485_p1, %p482_p0 }
   0x9   :  { %490 = shalt.err (!%p487_p2)
}
   0xa   :  { %s491_s7 = scalar_lea.vmem %s33_s21, 2048  ;;  %p496_p4 = scmp.lt.s32.totalorder %s33_s21, %s33_s21 }
   0xb   :  { %p492_p3 = scmp.ne.s32.totalorder %s33_s21, %s491_s7  ;;  %p497_p5 = scmp.lt.s32.totalorder %s491_s7, %s491_s7 }
   0xd   :  { %p498_p6 = por %p497_p5, %p496_p4 }
   0xf   :  { %p499_p7 = pnand %p498_p6, %p492_p3 }
  0x11   :  { %502 = shalt.err (!%p499_p7)
}
  0x12   :  { %s577_s8 = smov 128   ;;  %s578_s9 = smov 8  }
  0x13   :  { %38 = dma.hbm_to_vmem [thread:$0]  %s691_s2, 2048, %s33_s21, [#allocation9], %s577_s8, %s577_s8, %s578_s9  }
  0x14   :  { %s503_s14 = scalar_lea.hbm %s690_s1, 256 }
  0x15   :  { %p504_p8 = scmp.ne.s32.totalorder %s690_s1, %s503_s14  ;;  %p507_p9 = scmp.lt.u32.totalorder %s503_s14, %s690_s1 }
  0x17   :  { %p509_p10 = pnand %p507_p9, %p504_p8 }
  0x19   :  { %512 = shalt.err (!%p509_p10)
}
  0x1a   :  { %s513_s19 = scalar_lea.vmem %s616_s23, 256  ;;  %p518_p12 = scmp.lt.s32.totalorder %s616_s23, %s616_s23 }
  0x1b   :  { %p514_p11 = scmp.ne.s32.totalorder %s616_s23, %s513_s19  ;;  %p519_p13 = scmp.lt.s32.totalorder %s513_s19, %s513_s19 }
  0x1d   :  { %p520_p0 = por %p519_p13, %p518_p12 }
  0x1f   :  { %p521_p1 = pnand %p520_p0, %p514_p11 }
  0x21   :  { %524 = shalt.err (!%p521_p1)
}
  0x22   :  { %26 = dma.hbm_to_vmem [thread:$0]  %s690_s1, 256, %s616_s23, [#allocation6], %s577_s8, %s577_s8, %s578_s9  }
  0x23   :  { %s579_s0 = smov [#allocation10]   ;;  %s525_s25 = scalar_lea.hbm %s693_s4, 2048 }
  0x24   :  { %s46_s21 = sshll.u32 %s579_s0, 4  ;;  %p526_p2 = scmp.ne.s32.totalorder %s693_s4, %s525_s25  ;;  %s47_s21 = int_to_ptr.vmem [resolvable:$true] %s46_s21 }
  0x25   :  { %p529_p3 = scmp.lt.u32.totalorder %s525_s25, %s693_s4 }
  0x27   :  { %p531_p4 = pnand %p529_p3, %p526_p2 }
  0x29   :  { %534 = shalt.err (!%p531_p4)
}
  0x2a   :  { %s535_s30 = scalar_lea.vmem %s47_s21, 2048  ;;  %p540_p6 = scmp.lt.s32.totalorder %s47_s21, %s47_s21 }
  0x2b   :  { %p536_p5 = scmp.ne.s32.totalorder %s47_s21, %s535_s30  ;;  %p541_p7 = scmp.lt.s32.totalorder %s535_s30, %s535_s30 }
  0x2d   :  { %p542_p8 = por %p541_p7, %p540_p6 }
  0x2f   :  { %p543_p9 = pnand %p542_p8, %p536_p5 }
  0x31   :  { %546 = shalt.err (!%p543_p9)
}
  0x32   :  { %52 = dma.hbm_to_vmem [thread:$0]  %s693_s4, 2048, %s47_s21, [#allocation9], %s577_s8, %s577_s8, %s578_s9  }
  0x33   :  { %569 = dma.done.wait [#allocation6], 256  }
  0x34   :  { %570 = vsyncadd [#allocation6], 4294967040 }
  0x35   :  { %571 = dma.done.wait [#allocation9], 4096  }
  0x36   :  { %572 = vsyncadd [#allocation9], 4294963200  ;;  %v72_v0 = vld [vmem:[#allocation8] sm:$0xff]  ;;  %v73_v1 = vld [vmem:[#allocation8 + $0x8] sm:$0xff]  ;;  %s580_s12 = smov [#allocation11]  }
  0x37   :  { %v74_v2 = vld [vmem:[#allocation8 + $0x10] sm:$0xff]  ;;  %v411_v3 = vpack.c.bf16 %v73_v1, %v72_v0  ;;  %v75_v4 = vld [vmem:[#allocation8 + $0x18] sm:$0xff]  ;;  %v76_v6 = vld [vmem:[#allocation8 + $0x20] sm:$0xff]  ;;  %s290_s13 = sshll.u32 %s580_s12, 4  ;;  %s291_s13 = int_to_ptr.vmem [resolvable:$true] %s290_s13 }
  0x38   :  { %v415_v5 = vpack.c.bf16 %v75_v4, %v74_v2  ;;  %v77_v7 = vld [vmem:[#allocation8 + $0x28] sm:$0xff]  ;;  %v78_v9 = vld [vmem:[#allocation8 + $0x30] sm:$0xff]  ;;  %v79_v10 = vld [vmem:[#allocation8 + $0x38] sm:$0xff]  ;;  %p552_p11 = scmp.lt.s32.totalorder %s291_s13, %s291_s13 }
  0x39   :  { %412 = vmatprep.subr.bf16.mxu0 %v411_v3  ;;  %v419_v8 = vpack.c.bf16 %v77_v7, %v76_v6  ;;  %v70_v11 = vld [vmem:[#allocation5] sm:$0xff]  ;;  %v174_v12 = vld [vmem:[#allocation10] sm:$0xff]  ;;  %v175_v13 = vld [vmem:[#allocation10 + $0x8] sm:$0xff]  ;;  %v423_v20 = vpack.c.bf16 %v79_v10, %v78_v9 }
  0x3a   :  { %414 = vmatpush3.bf16.msra.mxu0 %v411_v3  ;;  %373 = vmatprep.mubr.f32.mxu0 %v70_v11  ;;  %v176_v14 = vld [vmem:[#allocation10 + $0x10] sm:$0xff]  ;;  %v443_v15 = vpack.c.bf16 %v175_v13, %v174_v12  ;;  %v177_v16 = vld [vmem:[#allocation10 + $0x18] sm:$0xff]  ;;  %v178_v18 = vld [vmem:[#allocation10 + $0x20] sm:$0xff] }
  0x3b   :  { %416 = vmatprep.subr.bf16.mxu0 %v415_v5  ;;  %v447_v17 = vpack.c.bf16 %v177_v16, %v176_v14  ;;  %v179_v19 = vld [vmem:[#allocation10 + $0x28] sm:$0xff]  ;;  %v80_v21 = vld [vmem:[#allocation8 + $0x40] sm:$0xff]  ;;  %v180_v24 = vld [vmem:[#allocation10 + $0x30] sm:$0xff] }
  0x3c   :  { %444 = vmatprep.subr.bf16.mxu1 %v443_v15  ;;  %v81_v22 = vld [vmem:[#allocation8 + $0x48] sm:$0xff]  ;;  %v451_v23 = vpack.c.bf16 %v179_v19, %v178_v18  ;;  %v181_v25 = vld [vmem:[#allocation10 + $0x38] sm:$0xff]  ;;  %v82_v27 = vld [vmem:[#allocation8 + $0x50] sm:$0xff] }
  0x3d   :  { %446 = vmatpush3.bf16.msra.mxu1 %v443_v15  ;;  %v427_v26 = vpack.c.bf16 %v81_v22, %v80_v21  ;;  %v83_v28 = vld [vmem:[#allocation8 + $0x58] sm:$0xff]  ;;  %v455_v29 = vpack.c.bf16 %v181_v25, %v180_v24  ;;  %v182_v30 = vld [vmem:[#allocation10 + $0x40] sm:$0xff]  ;;  %v183_v31 = vld [vmem:[#allocation10 + $0x48] sm:$0xff] }
  0x3e   :  { %418 = vmatpush3.bf16.msra.mxu0 %v415_v5  ;;  %448 = vmatprep.subr.bf16.mxu1 %v447_v17  ;;  %v431_v32 = vpack.c.bf16 %v83_v28, %v82_v27  ;;  %v84_v33 = vld [vmem:[#allocation8 + $0x60] sm:$0xff]  ;;  %v85_v34 = vld [vmem:[#allocation8 + $0x68] sm:$0xff]  ;;  %v459_v35 = vpack.c.bf16 %v183_v31, %v182_v30  ;;  %v184_v36 = vld [vmem:[#allocation10 + $0x50] sm:$0xff] }
  0x3f   :  { %420 = vmatprep.subr.bf16.mxu0 %v419_v8  ;;  %v185_v37 = vld [vmem:[#allocation10 + $0x58] sm:$0xff]  ;;  %v435_v38 = vpack.c.bf16 %v85_v34, %v84_v33  ;;  %v86_v39 = vld [vmem:[#allocation8 + $0x70] sm:$0xff]  ;;  %v186_v42 = vld [vmem:[#allocation10 + $0x60] sm:$0xff] }
  0x40   :  { %v87_v40 = vld [vmem:[#allocation8 + $0x78] sm:$0xff]  ;;  %v463_v41 = vpack.c.bf16 %v185_v37, %v184_v36  ;;  %v187_v43 = vld [vmem:[#allocation10 + $0x68] sm:$0xff]  ;;  %v188_v47 = vld [vmem:[#allocation10 + $0x70] sm:$0xff] }
  0x41   :  { %450 = vmatpush3.bf16.msra.mxu1 %v447_v17  ;;  %v439_v44 = vpack.c.bf16 %v87_v40, %v86_v39  ;;  %v467_v45 = vpack.c.bf16 %v187_v43, %v186_v42  ;;  %v71_v46 = vld [vmem:[#allocation5 + $0x8] sm:$0xff]  ;;  %v303_v50 = vld [vmem:[%s692_s3] ss:$0 sm:$0xff]  ;;  %s547_s3 = scalar_lea.vmem %s291_s13, 256 }
  0x42   :  { %422 = vmatpush3.bf16.msra.mxu0 %v419_v8  ;;  %452 = vmatprep.subr.bf16.mxu1 %v451_v23  ;;  %v189_v48 = vld [vmem:[#allocation10 + $0x78] sm:$0xff]  ;;  %v304_v57 = vld [vmem:[%s694_s5] ss:$0 sm:$0xff]  ;;  %p548_p10 = scmp.ne.s32.totalorder %s291_s13, %s547_s3  ;;  %p553_p12 = scmp.lt.s32.totalorder %s547_s3, %s547_s3 }
  0x43   :  { %424 = vmatprep.subr.bf16.mxu0 %v423_v20  ;;  %v471_v49 = vpack.c.bf16 %v189_v48, %v188_v47 }
  0x44   :  { %p554_p13 = por %p553_p12, %p552_p11 }
  0x45   :  { %454 = vmatpush3.bf16.msra.mxu1 %v451_v23 }
  0x46   :  { %426 = vmatpush3.bf16.msra.mxu0 %v423_v20  ;;  %456 = vmatprep.subr.bf16.mxu1 %v455_v29  ;;  %p555_p0 = pnand %p554_p13, %p548_p10 }
  0x47   :  { %428 = vmatprep.subr.bf16.mxu0 %v427_v26 }
  0x49   :  { %458 = vmatpush3.bf16.msra.mxu1 %v455_v29 }
  0x4a   :  { %430 = vmatpush3.bf16.msra.mxu0 %v427_v26  ;;  %460 = vmatprep.subr.bf16.mxu1 %v459_v35 }
  0x4b   :  { %432 = vmatprep.subr.bf16.mxu0 %v431_v32 }
  0x4d   :  { %462 = vmatpush3.bf16.msra.mxu1 %v459_v35 }
  0x4e   :  { %434 = vmatpush3.bf16.msra.mxu0 %v431_v32  ;;  %464 = vmatprep.subr.bf16.mxu1 %v463_v41 }
  0x4f   :  { %436 = vmatprep.subr.bf16.mxu0 %v435_v38 }
  0x51   :  { %466 = vmatpush3.bf16.msra.mxu1 %v463_v41 }
  0x52   :  { %438 = vmatpush3.bf16.msra.mxu0 %v435_v38  ;;  %468 = vmatprep.subr.bf16.mxu1 %v467_v45 }
  0x53   :  { %440 = vmatprep.subr.bf16.mxu0 %v439_v44 }
  0x55   :  { %470 = vmatpush3.bf16.msra.mxu1 %v467_v45 }
  0x56   :  { %442 = vmatpush3.bf16.msra.mxu0 %v439_v44  ;;  %472 = vmatprep.subr.bf16.mxu1 %v471_v49 }
  0x59   :  { %374 = vmatmul.mubr.f32.vlgmr.msra.gmra.mrb[0].mxu0 %v71_v46  ;;  %474 = vmatpush3.bf16.msra.mxu1 %v471_v49 }
 0x12c   :  { %v375_v51 = vpop.f32.mrb[0].mxu0 }
 0x12d   :  { %v167_v52 = vadd.f32 %v375_v51, %v303_v50  ;;  %v161_v53 = vpop.f32.mrb[1].mxu0 }
 0x12e   :  { %v162_v54 = vadd.f32 %v303_v50, %v161_v53 }
 0x12f   :  { %v171_v56 = vmax.f32 %v167_v52, 0.0 }
 0x130   :  { %v170_v55 = vmax.f32 %v162_v54, 0.0 }
 0x132   :  { %408 = vmatprep.mubr.f32.mxu1 %v170_v55 }
 0x133   :  { %409 = vmatmul.mubr.f32.vlgmr.msra.gmra.mrb[0].mxu1 %v171_v56 }
 0x206   :  { %v410_v58 = vpop.f32.mrb[0].mxu1 }
 0x207   :  { %v282_v59 = vadd.f32 %v410_v58, %v304_v57  ;;  %v256_v60 = vpop.f32.mrb[1].mxu1 }
 0x208   :  { %v281_v61 = vadd.f32 %v304_v57, %v256_v60 }
 0x209   :  { %284 = vst [vmem:[#allocation11 + $0x8] sm:$0xff] %v282_v59 }
 0x20a   :  { %283 = vst [vmem:[#allocation11] sm:$0xff] %v281_v61 }
 0x20b   :  { %558 = shalt.err (!%p555_p0)
}
 0x20c   :  { %s559_s5 = scalar_lea.hbm %s695_s6, 256 }
 0x20d   :  { %p560_p1 = scmp.ne.s32.totalorder %s695_s6, %s559_s5  ;;  %p563_p2 = scmp.lt.u32.totalorder %s559_s5, %s695_s6 }
 0x20f   :  { %p565_p3 = pnand %p563_p2, %p560_p1 }
 0x211   :  { %568 = shalt.err (!%p565_p3)
}
 0x212   :  { %296 = dma.vmem_to_hbm [thread:$0]  %s291_s13, 256, %s695_s6, [#allocation7], %s577_s8, %s577_s8, %s578_s9  }
 0x213   :  { %573 = dma.done.wait [#allocation7], 256  }
 0x214   :  { %574 = vsyncadd [#allocation7], 4294967040 }
 0x215   :  { %300 = vsyncpa [#allocation6], 1 }
 0x216   :  { %301 = vsyncpa [#allocation9], 1 }
 0x217   :  { %302 = vsyncpa [#allocation7], 1 }

</bundles_post_ra>
